<compile_context>
chip_gen: v7x
topology: tpu7x:2x2x1
jax: 0.10.0
libtpu: 0.0.40
codegen_flags: <defaults>
</compile_context>

<pallas_src>
import math

import jax
import jax.numpy as jnp
from jax.experimental import pallas as pl
from jax.experimental.pallas import tpu as pltpu

_LANES = 128
_SUBLANES = 8
_MAX_BLOCK_ROWS = 4096            # 4096 x 128 x 4B = 2 MiB per f32 block
_VMEM_INPUT_BUDGET = 32 << 20     # double-buffered input blocks budget
_VMEM_LIMIT = 48 << 20            # scoped VMEM; safe on v5e/v6e/v7x


def _round_up(n, m):
    return -(-n // m) * m


def _cdiv(a, b):
    return -(-a // b)


def _int_attr(obj, names):
    for name in names:
        v = getattr(obj, name, None)
        if v is None:
            continue
        try:
            v = int(v)
        except (TypeError, ValueError):
            continue
        if v >= 1:
            return v
    return None


def _num_tensorcores():
    """Best-effort TensorCore count of the local device (v7x: 2, v5e/v6e: 1).

    Falls back to 2 when unknown so 2-TC chips still get both cores; on 1-TC
    chips an nsplit of 2 only costs one extra accumulator block and at most
    one clamped no-compute grid step.
    """
    try:
        n = _int_attr(pltpu.get_tpu_info(),
                      ("num_cores", "core_count", "num_tensorcores",
                       "tensor_core_count", "num_tensor_cores"))
        if n:
            return n
    except Exception:
        pass
    try:
        n = _int_attr(jax.devices()[0], ("num_cores", "core_count"))
        if n:
            return n
    except Exception:
        pass
    return 2


def _split_slab(x):
    """Flatten to a lane-dense (rows, 128) slab plus a <128-element tail.

    When the element count is a multiple of 128 (the usual NCHW case) this is
    a free reshape — no pad, no copy.  Otherwise only the tiny (<128) tail is
    peeled off; it is reduced with plain jnp outside the kernel instead of
    padding (and thereby copying) the whole tensor in HBM.
    """
    flat = x.reshape(-1)
    n = flat.shape[0]
    rows = n // _LANES
    rem = n - rows * _LANES
    tail = flat[rows * _LANES:] if rem else None
    if rows == 0:
        return None, 0, tail
    body = flat[:rows * _LANES] if rem else flat
    return body.reshape(rows, _LANES), rows, tail


def _make_kernel(block_rows, nsplit, grid_blocks, sse_rows, lik_rows):
    """Fused SSE + sum-log reduction over a (nsplit, steps) grid.

    Logical block b = i * nsplit + s: round-robin over the (core-)parallel
    axis so both TensorCores (v7x) see a balanced mix of every stream.
    """
    has_sse = sse_rows is not None
    nlik = len(lik_rows)
    folds = block_rows // _SUBLANES

    # Two-level fold tree: (block_rows,128) -> (8,128) with ~2*sqrt(folds)
    # dependency depth instead of a serial folds-long add chain.
    f1 = 1
    for d in range(int(math.isqrt(folds)), 0, -1):
        if folds % d == 0:
            f1 = d
            break
    f2 = folds // f1

    def fold(x):
        if folds == 1:
            return x
        if f1 == 1:
            return x.reshape(folds, _SUBLANES, _LANES).sum(axis=0)
        return (x.reshape(f1, f2, _SUBLANES, _LANES)
                 .sum(axis=0).sum(axis=0))

    def kernel(*refs):
        pos = 0
        if has_sse:
            xh_ref, tg_ref = refs[0], refs[1]
            pos = 2
        lik_refs = refs[pos:pos + nlik]
        sse_ref, log_ref = refs[pos + nlik], refs[pos + nlik + 1]

        s = pl.program_id(0)
        i = pl.program_id(1)
        b = i * nsplit + s            # logical block index (round-robin)
        row0 = b * block_rows

        @pl.when(i == 0)
        def _():
            sse_ref[...] = jnp.zeros_like(sse_ref)
            log_ref[...] = jnp.zeros_like(log_ref)

        def row_mask(rows):
            ids = row0 + jax.lax.broadcasted_iota(
                jnp.int32, (block_rows, _LANES), 0)
            return ids < rows

        def emit(rows, body):
            """Per-stream guarded compute: unmasked fast path on interior
            blocks, the iota/compare/select mask only on the true tail block
            of a ragged stream, nothing once the stream is exhausted."""
            nblk = _cdiv(rows, block_rows)
            if rows % block_rows == 0:
                if nblk >= grid_blocks:      # stream spans the whole grid
                    body(None)
                else:
                    @pl.when(b < nblk)
                    def _():
                        body(None)
            else:
                if nblk > 1:
                    @pl.when(b < nblk - 1)
                    def _():
                        body(None)

                @pl.when(b == nblk - 1)
                def _():
                    body(row_mask(rows))

        # --- sum((x_hat - target)^2) -------------------------------------
        if has_sse:
            def sse_body(mask):
                d = (xh_ref[...].astype(jnp.float32)
                     - tg_ref[...].astype(jnp.float32))
                if mask is not None:          # tail block: zero the overhang
                    d = jnp.where(mask, d, 0.0)   # mask BEFORE squaring
                sse_ref[...] += fold(d * d)
            emit(sse_rows, sse_body)

        # --- sum(log(likelihood)) for every likelihood tensor --------------
        # (log rides the EUP slot; free while the kernel is HBM-bound.)
        for lref, lrows in zip(lik_refs, lik_rows):
            def log_body(mask, lref=lref):
                x = lref[...].astype(jnp.float32)
                if mask is not None:          # tail block: log(1) = 0
                    x = jnp.where(mask, x, 1.0)   # mask BEFORE the log
                log_ref[...] += fold(jnp.log(x))
            emit(lrows, log_body)

    return kernel


def _fused_sums(x_hat, target, lik_list):
    """Returns (sum((x_hat-target)^2), sum_j sum(log(lik_j))) as f32 scalars."""
    assert x_hat.shape == target.shape

    sse_extra = jnp.float32(0.0)
    log_extra = jnp.float32(0.0)

    xh_slab, xh_rows, xh_tail = _split_slab(x_hat)
    tg_slab, _, tg_tail = _split_slab(target)
    if xh_tail is not None:                    # <128-element ragged tail
        d = xh_tail.astype(jnp.float32) - tg_tail.astype(jnp.float32)
        sse_extra = sse_extra + jnp.sum(d * d)

    liks, lik_rows = [], []
    for lik in lik_list:
        slab, rows, tail = _split_slab(lik)
        if tail is not None:
            log_extra = log_extra + jnp.sum(jnp.log(tail.astype(jnp.float32)))
        if rows > 0:
            liks.append(slab)
            lik_rows.append(rows)

    has_sse = xh_rows > 0
    if not has_sse and not liks:
        return sse_extra, log_extra            # everything fit in the epilogue

    operands = ([xh_slab, tg_slab] if has_sse else []) + liks
    stream_rows = ([xh_rows, xh_rows] if has_sse else []) + lik_rows
    n_streams = len(operands)
    max_rows = max(stream_rows)

    # Biggest block keeping (#streams x 2 pipeline buffers x block bytes)
    # inside the VMEM budget, using the actual input itemsize (bf16 -> 2x).
    itemsize = max(a.dtype.itemsize for a in operands)
    cap = _VMEM_INPUT_BUDGET // (2 * n_streams * _LANES * itemsize)
    cap = max(_SUBLANES, (cap // _SUBLANES) * _SUBLANES)
    block_rows = max(_SUBLANES,
                     min(_MAX_BLOCK_ROWS, _round_up(max_rows, _SUBLANES), cap))

    total_blocks = _cdiv(max_rows, block_rows)
    nsplit = max(1, min(_num_tensorcores(), 2, total_blocks))
    steps = _cdiv(total_blocks, nsplit)
    grid_blocks = nsplit * steps

    def in_map(rows):
        nblk = _cdiv(rows, block_rows)

        def idx(s, i):
            # Round-robin block assignment.  Clamp once this stream is
            # exhausted: the block index stops changing (no further DMA) and
            # the kernel guard (b vs nblk with the SAME b = i*nsplit + s)
            # skips the compute.
            return (jnp.minimum(i * nsplit + s, nblk - 1), 0)
        return idx

    in_specs = [pl.BlockSpec((block_rows, _LANES), in_map(r))
                for r in stream_rows]
    out_specs = [pl.BlockSpec((_SUBLANES, _LANES), lambda s, i: (s, 0)),
                 pl.BlockSpec((_SUBLANES, _LANES), lambda s, i: (s, 0))]
    out_shape = [
        jax.ShapeDtypeStruct((nsplit * _SUBLANES, _LANES), jnp.float32),
        jax.ShapeDtypeStruct((nsplit * _SUBLANES, _LANES), jnp.float32),
    ]

    kernel = _make_kernel(block_rows, nsplit, grid_blocks,
                          xh_rows if has_sse else None, tuple(lik_rows))

    def run(lead_sem):
        return pl.pallas_call(
            kernel,
            out_shape=out_shape,
            grid_spec=pltpu.PrefetchScalarGridSpec(
                num_scalar_prefetch=0,
                grid=(nsplit, steps),
                in_specs=in_specs,
                out_specs=out_specs),
            compiler_params=pltpu.CompilerParams(
                dimension_semantics=(lead_sem, "arbitrary"),
                vmem_limit_bytes=_VMEM_LIMIT),
        )(*operands)

    # On multi-TensorCore chips (v7x) use CORE_PARALLEL for the leading axis
    # (plain "parallel" is a near-no-op in codegen); fall back gracefully on
    # chips/toolchains where it is not supported.
    if nsplit > 1:
        lead_sems = []
        core_par = getattr(pltpu, "CORE_PARALLEL", None)
        if core_par is not None:
            lead_sems.append(core_par)
        lead_sems.append("parallel")
    else:
        lead_sems = ["arbitrary"]

    sse_p = log_p = None
    last_err = None
    for sem0 in lead_sems:
        try:
            sse_p, log_p = run(sem0)
            break
        except Exception as e:        # e.g. CORE_PARALLEL unsupported here
            last_err = e
            sse_p = log_p = None
    if sse_p is None:
        raise last_err

    # Single cross-lane reduce, done once on the lane-dense partials.
    return jnp.sum(sse_p) + sse_extra, jnp.sum(log_p) + log_extra


def rate_distortion_loss(output, target, lmbda=0.01):
    """Pallas-backed equivalent of RateDistortionLoss.forward.

    output: {'likelihoods': {name: array}, 'x_hat': array (N,C,H,W)}
    target: array (N,C,H,W)
    """
    N, _, H, W = target.shape
    num_pixels = N * H * W

    lik_list = list(output['likelihoods'].values())
    sse, log_sum = _fused_sums(output['x_hat'], target, lik_list)

    bpp_loss = log_sum / (-math.log(2) * num_pixels)
    mse_loss = sse / jnp.float32(target.size)     # nn.MSELoss() default: mean
    loss = lmbda * (255.0 ** 2) * mse_loss + bpp_loss
    return {'bpp_loss': bpp_loss, 'mse_loss': mse_loss, 'loss': loss}


# ----------------------------- reference -------------------------------------

def _reference(output, target, lmbda=0.01):
    N, _, H, W = target.shape
    num_pixels = N * H * W
    bpp = sum(
        jnp.sum(jnp.log(l)) / (-math.log(2) * num_pixels)
        for l in output['likelihoods'].values()
    )
    mse = jnp.mean((output['x_hat'] - target) ** 2)
    return {'bpp_loss': bpp, 'mse_loss': mse,
            'loss': lmbda * 255.0 ** 2 * mse + bpp}


if __name__ == "__main__":
    key = jax.random.PRNGKey(0)
    k1, k2, k3, k4 = jax.random.split(key, 4)

    N, C, H, W = 2, 4, 16, 16
    target = jax.random.normal(k1, (N, C, H, W), jnp.float32)
    x_hat = target + 0.05 * jax.random.normal(k2, (N, C, H, W), jnp.float32)

    # Likelihoods must be in (0, 1]; two entropy-model outputs ('y', 'z').
    # 'z' has 64 elements (not a multiple of 128) to exercise the ragged path
    # (tiny-tail jnp epilogue, no whole-tensor pad).
    lik_y = jax.random.uniform(k3, (N, 8, H // 4, W // 4), jnp.float32,
                               minval=0.05, maxval=1.0)
    lik_z = jax.random.uniform(k4, (N, 8, H // 8, W // 8), jnp.float32,
                               minval=0.05, maxval=1.0)

    output = {'x_hat': x_hat, 'likelihoods': {'y': lik_y, 'z': lik_z}}

    got = rate_distortion_loss(output, target, lmbda=0.01)
    jax.block_until_ready(got)

    want = _reference(output, target, lmbda=0.01)
    for k in ('bpp_loss', 'mse_loss', 'loss'):
        assert jnp.allclose(got[k], want[k], rtol=1e-5, atol=1e-5), (
            k, got[k], want[k])

    print("KERNEL_OK")
</pallas_src>

<mosaic_0001>
module attributes {stable_mosaic.version = 11 : i64} {
  func.func @kernel(%arg0: i32, %arg1: i32, %arg2: memref<16x128xf32, #tpu.memory_space<vmem>>, %arg3: memref<16x128xf32, #tpu.memory_space<vmem>>, %arg4: memref<16x128xf32, #tpu.memory_space<vmem>>, %arg5: memref<8x128xf32, #tpu.memory_space<vmem>>, %arg6: memref<8x128xf32, #tpu.memory_space<vmem>>) attributes {dimension_semantics = [#tpu.dimension_semantics<arbitrary>, #tpu.dimension_semantics<arbitrary>], iteration_bounds = array<i64: 1, 1>, scalar_prefetch = 0 : i64, scratch_operands = 0 : i64, tpu.core_type = #tpu.core_type<tc>, window_params = [{transform_indices = @transform_0, window_bounds = array<i64: 16, 128>}, {transform_indices = @transform_1, window_bounds = array<i64: 16, 128>}, {transform_indices = @transform_2, window_bounds = array<i64: 16, 128>}, {transform_indices = @transform_3, window_bounds = array<i64: 8, 128>}, {transform_indices = @transform_4, window_bounds = array<i64: 8, 128>}]} {
    %c1_i32 = arith.constant 1 : i32
    %0 = arith.muli %arg1, %c1_i32 : i32
    %1 = arith.addi %0, %arg0 : i32
    %c16_i32 = arith.constant 16 : i32
    %2 = arith.muli %1, %c16_i32 : i32
    %c0_i32 = arith.constant 0 : i32
    %3 = arith.cmpi eq, %arg1, %c0_i32 : i32
    %4 = arith.extui %3 : i1 to i32
    %c0_i32_0 = arith.constant 0 : i32
    %5 = arith.cmpi ne, %4, %c0_i32_0 : i32
    scf.if %5 {
      %cst_10 = arith.constant 0.000000e+00 : f32
      %18 = vector.broadcast %cst_10 : f32 to vector<8x128xf32>
      %c0_11 = arith.constant 0 : index
      %c0_12 = arith.constant 0 : index
      %19 = vector.load %arg5[%c0_11, %c0_12] : memref<8x128xf32, #tpu.memory_space<vmem>>, vector<8x128xf32>
      tpu.vector_store %arg5[%c0_11, %c0_12], %18 {strides = array<i32>} : memref<8x128xf32, #tpu.memory_space<vmem>>, vector<8x128xf32>,
      %cst_13 = arith.constant 0.000000e+00 : f32
      %20 = vector.broadcast %cst_13 : f32 to vector<8x128xf32>
      %c0_14 = arith.constant 0 : index
      %c0_15 = arith.constant 0 : index
      %21 = vector.load %arg6[%c0_14, %c0_15] : memref<8x128xf32, #tpu.memory_space<vmem>>, vector<8x128xf32>
      tpu.vector_store %arg6[%c0_14, %c0_15], %20 {strides = array<i32>} : memref<8x128xf32, #tpu.memory_space<vmem>>, vector<8x128xf32>,
    } else {
    }
    %c0 = arith.constant 0 : index
    %c0_1 = arith.constant 0 : index
    %6 = vector.load %arg2[%c0, %c0_1] : memref<16x128xf32, #tpu.memory_space<vmem>>, vector<16x128xf32>
    %c0_2 = arith.constant 0 : index
    %c0_3 = arith.constant 0 : index
    %7 = vector.load %arg3[%c0_2, %c0_3] : memref<16x128xf32, #tpu.memory_space<vmem>>, vector<16x128xf32>
    %8 = arith.subf %6, %7 : vector<16x128xf32>
    %c0_4 = arith.constant 0 : index
    %c0_5 = arith.constant 0 : index
    %9 = vector.load %arg5[%c0_4, %c0_5] : memref<8x128xf32, #tpu.memory_space<vmem>>, vector<8x128xf32>
    %10 = arith.mulf %8, %8 : vector<16x128xf32>
    %11 = vector.shape_cast %10 : vector<16x128xf32> to vector<2x8x128xf32>
    %cst = arith.constant dense<0.000000e+00> : vector<8x128xf32>
    %12 = vector.multi_reduction <add>, %11, %cst [0] : vector<2x8x128xf32> to vector<8x128xf32>
    %13 = arith.addf %9, %12 : vector<8x128xf32>
    %c0_6 = arith.constant 0 : index
    %c0_7 = arith.constant 0 : index
    %14 = vector.load %arg5[%c0_6, %c0_7] : memref<8x128xf32, #tpu.memory_space<vmem>>, vector<8x128xf32>
    tpu.vector_store %arg5[%c0_6, %c0_7], %13 {strides = array<i32>} : memref<8x128xf32, #tpu.memory_space<vmem>>, vector<8x128xf32>,
    %c0_i32_8 = arith.constant 0 : i32
    %15 = arith.cmpi eq, %1, %c0_i32_8 : i32
    %16 = arith.extui %15 : i1 to i32
    %c0_i32_9 = arith.constant 0 : i32
    %17 = arith.cmpi ne, %16, %c0_i32_9 : i32
    scf.if %17 {
      %18 = tpu.iota {dimensions = array<i32: 0>} : vector<16x128xi32>
      %19 = vector.broadcast %2 : i32 to vector<16x128xi32>
      %20 = arith.addi %19, %18 : vector<16x128xi32>
      %c2_i32 = arith.constant 2 : i32
      %21 = vector.broadcast %c2_i32 : i32 to vector<16x128xi32>
      %22 = arith.cmpi slt, %20, %21 : vector<16x128xi32>
      %c0_10 = arith.constant 0 : index
      %c0_11 = arith.constant 0 : index
      %23 = vector.load %arg4[%c0_10, %c0_11] : memref<16x128xf32, #tpu.memory_space<vmem>>, vector<16x128xf32>
      %cst_12 = arith.constant 1.000000e+00 : f32
      %24 = vector.broadcast %cst_12 : f32 to vector<16x128xf32>
      %25 = arith.select %22, %23, %24 : vector<16x128xi1>, vector<16x128xf32>
      %c0_13 = arith.constant 0 : index
      %c0_14 = arith.constant 0 : index
      %26 = vector.load %arg6[%c0_13, %c0_14] : memref<8x128xf32, #tpu.memory_space<vmem>>, vector<8x128xf32>
      %27 = math.log %25 : vector<16x128xf32>
      %28 = vector.shape_cast %27 : vector<16x128xf32> to vector<2x8x128xf32>
      %cst_15 = arith.constant dense<0.000000e+00> : vector<8x128xf32>
      %29 = vector.multi_reduction <add>, %28, %cst_15 [0] : vector<2x8x128xf32> to vector<8x128xf32>
      %30 = arith.addf %26, %29 : vector<8x128xf32>
      %c0_16 = arith.constant 0 : index
      %c0_17 = arith.constant 0 : index
      %31 = vector.load %arg6[%c0_16, %c0_17] : memref<8x128xf32, #tpu.memory_space<vmem>>, vector<8x128xf32>
      tpu.vector_store %arg6[%c0_16, %c0_17], %30 {strides = array<i32>} : memref<8x128xf32, #tpu.memory_space<vmem>>, vector<8x128xf32>,
    } else {
    }
    return
  }
  func.func @transform_0(%arg0: i32, %arg1: i32) -> (i32, i32) {
    %c1_i32 = arith.constant 1 : i32
    %0 = arith.muli %arg1, %c1_i32 : i32
    %1 = arith.addi %0, %arg0 : i32
    %c0_i32 = arith.constant 0 : i32
    %2 = arith.minsi %1, %c0_i32 : i32
    %c0_i32_0 = arith.constant 0 : i32
    %c0_i32_1 = arith.constant 0 : i32
    return %2, %c0_i32_0 : i32, i32
  }
  func.func @transform_1(%arg0: i32, %arg1: i32) -> (i32, i32) {
    %c1_i32 = arith.constant 1 : i32
    %0 = arith.muli %arg1, %c1_i32 : i32
    %1 = arith.addi %0, %arg0 : i32
    %c0_i32 = arith.constant 0 : i32
    %2 = arith.minsi %1, %c0_i32 : i32
    %c0_i32_0 = arith.constant 0 : i32
    %c0_i32_1 = arith.constant 0 : i32
    return %2, %c0_i32_0 : i32, i32
  }
  func.func @transform_2(%arg0: i32, %arg1: i32) -> (i32, i32) {
    %c1_i32 = arith.constant 1 : i32
    %0 = arith.muli %arg1, %c1_i32 : i32
    %1 = arith.addi %0, %arg0 : i32
    %c0_i32 = arith.constant 0 : i32
    %2 = arith.minsi %1, %c0_i32 : i32
    %c0_i32_0 = arith.constant 0 : i32
    %c0_i32_1 = arith.constant 0 : i32
    return %2, %c0_i32_0 : i32, i32
  }
  func.func @transform_3(%arg0: i32, %arg1: i32) -> (i32, i32) {
    %c0_i32 = arith.constant 0 : i32
    %c0_i32_0 = arith.constant 0 : i32
    return %arg0, %c0_i32 : i32, i32
  }
  func.func @transform_4(%arg0: i32, %arg1: i32) -> (i32, i32) {
    %c0_i32 = arith.constant 0 : i32
    %c0_i32_0 = arith.constant 0 : i32
    return %arg0, %c0_i32 : i32, i32
  }
}

</mosaic_0001>

<bundles_post_ra>
// kernel: tpu_custom_call.1
= control target key start
LH: loop header
LB: loop body
LE: loop exit
PB: predicated region body
PF: predicated region fallthrough
CT: control target
= control target key end

     0   :  { %10 = vsyncpa [#allocation3], 0  ;;  %s379_s0 = inlined_call_operand.hbm [shape: f32[16,128], index: 0, kind: input, shape index: {}]   ;;  %s380_s1 = inlined_call_operand.hbm [shape: f32[16,128], index: 1, kind: input, shape index: {}]   ;;  %s381_s2 = inlined_call_operand.vmem [shape: f32[2,128], index: 2, kind: input, shape index: {}]   ;;  %s382_s3 = inlined_call_operand.hbm [shape: f32[8,128], index: 3, kind: output, shape index: {0}]   ;;  %s383_s4 = inlined_call_operand.hbm [shape: f32[8,128], index: 4, kind: output, shape index: {1}]  }
   0x1   :  { %11 = vsyncpa [#allocation6], 0 }
   0x2   :  { %12 = vsyncpa [#allocation4], 0 }
   0x3   :  { %13 = vsyncpa [#allocation9], 0  ;;  %s297_s15 = smov [#allocation2]   ;;  %s201_s19 = scalar_lea.hbm %s379_s0, 256 }
   0x4   :  { %s25_s16 = sshll.u32 %s297_s15, 4  ;;  %p202_p0 = scmp.ne.s32.totalorder %s379_s0, %s201_s19  ;;  %s26_s16 = int_to_ptr.vmem [resolvable:$true] %s25_s16 }
   0x5   :  { %p205_p1 = scmp.lt.u32.totalorder %s201_s19, %s379_s0 }
   0x7   :  { %p207_p2 = pnand %p205_p1, %p202_p0 }
   0x9   :  { %210 = shalt.err (!%p207_p2)
}
   0xa   :  { %s211_s24 = scalar_lea.vmem %s26_s16, 256  ;;  %p216_p4 = scmp.lt.s32.totalorder %s26_s16, %s26_s16 }
   0xb   :  { %p212_p3 = scmp.ne.s32.totalorder %s26_s16, %s211_s24  ;;  %p217_p5 = scmp.lt.s32.totalorder %s211_s24, %s211_s24 }
   0xd   :  { %p218_p6 = por %p217_p5, %p216_p4 }
   0xf   :  { %p219_p7 = pnand %p218_p6, %p212_p3 }
  0x11   :  { %222 = shalt.err (!%p219_p7)
}
  0x12   :  { %s298_s25 = smov 128   ;;  %s299_s26 = smov 8  }
  0x13   :  { %31 = dma.hbm_to_vmem [thread:$0]  %s379_s0, 256, %s26_s16, [#allocation3], %s298_s25, %s298_s25, %s299_s26  }
  0x14   :  { %s300_s29 = smov [#allocation5]   ;;  %s223_s7 = scalar_lea.hbm %s380_s1, 256 }
  0x15   :  { %s43_s30 = sshll.u32 %s300_s29, 4  ;;  %p224_p8 = scmp.ne.s32.totalorder %s380_s1, %s223_s7  ;;  %s44_s30 = int_to_ptr.vmem [resolvable:$true] %s43_s30 }
  0x16   :  { %p227_p9 = scmp.lt.u32.totalorder %s223_s7, %s380_s1 }
  0x18   :  { %p229_p10 = pnand %p227_p9, %p224_p8 }
  0x1a   :  { %232 = shalt.err (!%p229_p10)
}
  0x1b   :  { %s233_s12 = scalar_lea.vmem %s44_s30, 256  ;;  %p238_p12 = scmp.lt.s32.totalorder %s44_s30, %s44_s30 }
  0x1c   :  { %p234_p11 = scmp.ne.s32.totalorder %s44_s30, %s233_s12  ;;  %p239_p13 = scmp.lt.s32.totalorder %s233_s12, %s233_s12 }
  0x1e   :  { %p240_p0 = por %p239_p13, %p238_p12 }
  0x20   :  { %p241_p1 = pnand %p240_p0, %p234_p11 }
  0x22   :  { %244 = shalt.err (!%p241_p1)
}
  0x23   :  { %49 = dma.hbm_to_vmem [thread:$0]  %s380_s1, 256, %s44_s30, [#allocation6], %s298_s25, %s298_s25, %s299_s26  }
  0x24   :  { %289 = dma.done.wait [#allocation3], 256  }
  0x25   :  { %290 = vsyncadd [#allocation3], 4294967040 }
  0x26   :  { %291 = dma.done.wait [#allocation6], 256  }
  0x27   :  { %292 = vsyncadd [#allocation6], 4294967040  ;;  %v132_v0 = vlaneseq  ;;  %v116_v2 = vld [vmem:[#allocation2] sm:$0xff]  ;;  %v117_v3 = vld [vmem:[#allocation2 + $0x8] sm:$0xff]  ;;  %s301_s1 = smov [#allocation7]  }
  0x28   :  { %v118_v4 = vld [vmem:[#allocation5] sm:$0xff]  ;;  %v119_v5 = vld [vmem:[#allocation5 + $0x8] sm:$0xff]  ;;  %v140_v7 = vld [vmem:[%s381_s2] sm:$0xff]  ;;  %s158_s16 = sshll.u32 %s301_s1, 4  ;;  %s159_s16 = int_to_ptr.vmem [resolvable:$true] %s158_s16 }
  0x29   :  { %v133_v1 = vshrl.u32 %v132_v0, 7  ;;  %v120_v6 = vsub.f32 %v116_v2, %v118_v4  ;;  %v121_v8 = vsub.f32 %v117_v3, %v119_v5  ;;  %s245_s17 = scalar_lea.vmem %s159_s16, 128  ;;  %p250_p3 = scmp.lt.s32.totalorder %s159_s16, %s159_s16 }
  0x2a   :  { %p246_p2 = scmp.ne.s32.totalorder %s159_s16, %s245_s17  ;;  %p251_p4 = scmp.lt.s32.totalorder %s245_s17, %s245_s17 }
  0x2b   :  { %vm138_vm0 = vcmp.lt.s32.totalorder %v133_v1, 2  ;;  %v123_v10 = vmul.f32 %v120_v6, %v120_v6  ;;  %v124_v11 = vmul.f32 %v121_v8, %v121_v8 }
  0x2c   :  { %v142_v9 = vsel %vm138_vm0, %v140_v7, 1.0  ;;  %p252_p5 = por %p251_p4, %p250_p3 }
  0x2d   :  { %199 = vlog2.f32 %v142_v9  ;;  %v125_v12 = vadd.f32 %v124_v11, %v123_v10 }
  0x2e   :  { %p253_p6 = pnand %p252_p5, %p246_p2 }
  0x2f   :  { %127 = vst [vmem:[#allocation7] sm:$0xff] %v125_v12 }
  0x30   :  { %256 = shalt.err (!%p253_p6)
}
  0x31   :  { %s257_s2 = scalar_lea.hbm %s382_s3, 128 }
  0x32   :  { %p258_p7 = scmp.ne.s32.totalorder %s382_s3, %s257_s2  ;;  %p261_p8 = scmp.lt.u32.totalorder %s257_s2, %s382_s3 }
  0x34   :  { %p263_p9 = pnand %p261_p8, %p258_p7 }
  0x36   :  { %266 = shalt.err (!%p263_p9)
}
  0x37   :  { %161 = dma.vmem_to_hbm [thread:$0]  %s159_s16, 128, %s382_s3, [#allocation4]   ;;  %v200_v13 = vpop.eup %199 }
  0x38   :  { %s302_s26 = smov [#allocation8]   ;;  %v146_v14 = vmul.f32 0.6931472, %v200_v13 }
  0x39   :  { %s168_s27 = sshll.u32 %s302_s26, 4  ;;  %s169_s27 = int_to_ptr.vmem [resolvable:$true] %s168_s27 }
  0x3a   :  { %151 = vst [vmem:[#allocation8] sm:$0xff] %v146_v14  ;;  %s267_s28 = scalar_lea.vmem %s169_s27, 128  ;;  %p272_p11 = scmp.lt.s32.totalorder %s169_s27, %s169_s27 }
  0x3b   :  { %p268_p10 = scmp.ne.s32.totalorder %s169_s27, %s267_s28  ;;  %p273_p12 = scmp.lt.s32.totalorder %s267_s28, %s267_s28 }
  0x3d   :  { %p274_p13 = por %p273_p12, %p272_p11 }
  0x3f   :  { %p275_p0 = pnand %p274_p13, %p268_p10 }
  0x41   :  { %278 = shalt.err (!%p275_p0)
}
  0x42   :  { %s279_s5 = scalar_lea.hbm %s383_s4, 128 }
  0x43   :  { %p280_p1 = scmp.ne.s32.totalorder %s383_s4, %s279_s5  ;;  %p283_p2 = scmp.lt.u32.totalorder %s279_s5, %s383_s4 }
  0x45   :  { %p285_p3 = pnand %p283_p2, %p280_p1 }
  0x47   :  { %288 = shalt.err (!%p285_p3)
}
  0x48   :  { %171 = dma.vmem_to_hbm [thread:$0]  %s169_s27, 128, %s383_s4, [#allocation9]  }
  0x49   :  { %293 = dma.done.wait [#allocation4], 128  }
  0x4a   :  { %294 = vsyncadd [#allocation4], 4294967168 }
  0x4b   :  { %295 = dma.done.wait [#allocation9], 128  }
  0x4c   :  { %296 = vsyncadd [#allocation9], 4294967168 }
  0x4d   :  { %178 = vsyncpa [#allocation3], 1 }
  0x4e   :  { %179 = vsyncpa [#allocation6], 1 }
  0x4f   :  { %180 = vsyncpa [#allocation4], 1 }
  0x50   :  { %181 = vsyncpa [#allocation9], 1 }

</bundles_post_ra>
